<compile_context>
chip_gen: v5e
topology: v5e:2x2
jax: 0.10.0
libtpu: 0.0.40
codegen_flags: <defaults>
</compile_context>

<pallas_src>
import math
from functools import partial

import jax
import jax.numpy as jnp
import numpy as np
from jax.experimental import pallas as pl
from jax.experimental.pallas import tpu as pltpu

# ---------------- configuration (small, consistent with the module) ----------------
B = 2          # batch
S = 8          # seq_len
H = 32         # hidden_dim
NUM_HEADS = 4
HEAD_SIZE = H // NUM_HEADS
TEMPERATURE = 1.0


# ---------------- ALiBi bias table (constant, index-math only -> host glue) ----------------
def _alibi_slopes(heads):
    def pow2_slopes(n):
        start = 2.0 ** (-2.0 ** (-(math.log2(n) - 3)))
        return [start * (start ** i) for i in range(n)]

    if math.log2(heads).is_integer():
        return pow2_slopes(heads)
    closest = 2 ** math.floor(math.log2(heads))
    return (pow2_slopes(closest)
            + pow2_slopes(2 * closest)[0::2][: heads - closest])


def make_alibi_bias(num_heads, seq_len):
    # matches AlibiPositionalBias(heads=num_heads//2 + (num_heads % 2 == 1),
    #                             total_heads=num_heads).forward(seq_len, seq_len)
    alibi_heads = num_heads // 2 + (num_heads % 2 == 1)
    slopes = np.asarray(_alibi_slopes(alibi_heads), dtype=np.float32)[:, None, None]
    i_ar = np.arange(0, seq_len)
    j_ar = np.arange(seq_len)
    bias = -np.abs(j_ar[None, None, :] - i_ar[None, :, None]).astype(np.float32)  # [1, i, j]
    bias = bias * slopes                                                           # [ah, i, j]
    pad = num_heads - bias.shape[0]
    if pad > 0:
        bias = np.concatenate(
            [bias, np.zeros((pad, seq_len, seq_len), dtype=np.float32)], axis=0)
    return jnp.asarray(bias)                                                       # [nh, S, S]


# ---------------- one-time parameter prep (hoisted off the per-call path) ----------------
def prepare_params(weights, in_bias, out_w, out_bias, gamma, num_heads, seq_len,
                   temperature=TEMPERATURE):
    """One-time parameter/constant relayout.

    Produced layouts (head-major; the in-kernel g ordering is head * bb + batch and must
    stay consistent across wqkv/bqkv/alibi/gamma/wo -- see split_heads / bias.reshape):
      wqkv  [H, 3H]    columns = [Q_h0..Q_h{nh-1} | K_h0.. | V_h0..]; Q columns pre-scaled
                       by 1/(temperature*sqrt(head_size))
      bqkv  [1, 3H]    matching bias (Q part pre-scaled)
      gamma [nh,1,1,1]
      alibi [nh,1,S,S]
      wo    [nh,hs,H]  per-head row blocks of out_w.T
      bo    [1, H]
    """
    h = weights.shape[0]
    nh = num_heads
    hs = h // nh
    scale = 1.0 / (temperature * (hs ** 0.5))
    f32 = jnp.float32

    chunk_scale = jnp.array([scale, 1.0, 1.0], dtype=f32)            # q, k, v
    # Original `weights` column layout: col = head*3hs + chunk*hs + d.
    w4 = weights.astype(f32).reshape(h, nh, 3, hs)                   # [H, head, chunk, hs]
    w4 = jnp.transpose(w4, (0, 2, 1, 3)) * chunk_scale[None, :, None, None]
    wqkv = w4.reshape(h, 3 * h)                                      # col = chunk*H + head*hs + d
    b4 = in_bias.astype(f32).reshape(nh, 3, hs)
    b4 = jnp.transpose(b4, (1, 0, 2)) * chunk_scale[:, None, None]
    bqkv = b4.reshape(1, 3 * h)

    gamma_k = gamma.astype(f32).reshape(nh, 1, 1, 1)
    alibi = make_alibi_bias(nh, seq_len).reshape(nh, 1, seq_len, seq_len)
    wo = out_w.astype(f32).T.reshape(nh, hs, h)                      # row blocks of out_w.T
    bo = out_bias.astype(f32).reshape(1, h)

    params = (wqkv, bqkv, gamma_k, alibi, wo, bo)
    return jax.tree_util.tree_map(jax.block_until_ready, params)


# ---------------- Pallas kernel ----------------
def mhsa_kernel(x_ref,       # VMEM [bb, S, H]
                adj_ref,     # VMEM [bb, 1, S, S]
                wqkv_ref,    # VMEM [H, 3H]
                bqkv_ref,    # VMEM [1, 3H]
                gamma_ref,   # VMEM [nh, 1, 1, 1]
                alibi_ref,   # VMEM [nh, 1, S, S]
                wo_ref,      # VMEM [nh, hs, H]
                bo_ref,      # VMEM [1, H]
                o_ref):      # VMEM [bb, S, H]
    bb, s, h = x_ref.shape
    nh, hs, _ = wo_ref.shape
    g = nh * bb
    f32 = jnp.float32

    # --- fused QKV projection: ONE wide MXU matmul (score scale pre-folded into Wq/bq) ---
    xf = x_ref[...].reshape(bb * s, h)                                # leading-dim merge only
    qkv = jnp.dot(xf, wqkv_ref[...], preferred_element_type=f32) + bqkv_ref[...]   # [bb*S, 3H]

    # --- per-head views via cheap static lane READ slices, stacked on a new leading dim ---
    # g ordering = head * bb + batch (must match the bias reshape and ctx2 reshape below).
    def split_heads(chunk):
        base = chunk * h
        cols = [qkv[:, base + i * hs: base + (i + 1) * hs] for i in range(nh)]
        return jnp.stack(cols, axis=0).reshape(g, s, hs)              # [g, S, hs]

    q = split_heads(0)
    k = split_heads(1)
    v = split_heads(2)

    # --- attention scores + ALiBi + gamma-scaled adjacency, one batched contraction ---
    att = jnp.einsum('gqd,gkd->gqk', q, k, preferred_element_type=f32)    # [g, S, S]
    adjb = adj_ref[...].reshape(1, bb, s, s)                              # [1, bb, S, S]
    bias = alibi_ref[...] + gamma_ref[...] * adjb                         # [nh, bb, S, S]
    att = att + bias.reshape(g, s, s)

    # --- softmax: single pass over the stacked block (exact divide, review note) ---
    att = att - jnp.max(att, axis=-1, keepdims=True)
    att = jnp.exp(att)
    att = att / jnp.sum(att, axis=-1, keepdims=True)
    # TODO(synk): optional attention `mask` multiply and training-mode dropout are identity
    # in this configuration (mask=None, eval-style forward) and are not implemented here.

    ctx = jnp.einsum('gqk,gkd->gqd', att, v, preferred_element_type=f32)  # [g, S, hs]

    # --- output projection: per-head blocks of out_w.T, reduced with a leading-dim sum ---
    ctx2 = ctx.reshape(nh, bb * s, hs)                                     # leading regroup
    outh = jnp.einsum('hmd,hde->hme', ctx2, wo_ref[...],
                      preferred_element_type=f32)                          # [nh, bb*S, H]
    out = jnp.sum(outh, axis=0) + bo_ref[...]                              # [bb*S, H]
    o_ref[...] = out.reshape(bb, s, h).astype(o_ref.dtype)


# ---------------- wrapper (per-call path: pallas_call only) ----------------
def _num_batch_blocks(batch):
    # v7x has 2 TensorCores per chip -> shard the batch across them via a parallel grid.
    # Single-TC generations (v5e/v6e) keep the 1-step form (avoids per-step overhead).
    try:
        kind = jax.devices()[0].device_kind.lower()
        two_core = ("v7" in kind) or ("7x" in kind)
    except Exception:
        two_core = False
    return 2 if (two_core and batch % 2 == 0) else 1


@jax.jit
def mhsa_forward(x, adj, params):
    wqkv, bqkv, gamma, alibi, wo, bo = params
    b, s, h = x.shape
    nh, hs, _ = wo.shape
    g = nh * b
    nblk = _num_batch_blocks(b)
    bb = b // nblk

    cost = pl.CostEstimate(
        flops=int(2 * (b * s * h * 3 * h + 2 * g * s * s * hs + b * s * h * h)),
        transcendentals=int(g * s * s),
        bytes_accessed=int(4 * (x.size + adj.size + wqkv.size + bqkv.size
                                + gamma.size + alibi.size + wo.size + bo.size
                                + b * s * h)),
    )

    def const_spec(shape):
        nd = len(shape)
        return pl.BlockSpec(shape, lambda i, _nd=nd: (0,) * _nd)

    return pl.pallas_call(
        mhsa_kernel,
        out_shape=jax.ShapeDtypeStruct((b, s, h), x.dtype),
        grid=(nblk,),
        in_specs=[
            pl.BlockSpec((bb, s, h), lambda i: (i, 0, 0)),        # x
            pl.BlockSpec((bb, 1, s, s), lambda i: (i, 0, 0, 0)),  # adj
            const_spec(wqkv.shape),
            const_spec(bqkv.shape),
            const_spec(gamma.shape),
            const_spec(alibi.shape),
            const_spec(wo.shape),
            const_spec(bo.shape),
        ],
        out_specs=pl.BlockSpec((bb, s, h), lambda i: (i, 0, 0)),
        compiler_params=pltpu.CompilerParams(dimension_semantics=("parallel",)),
        cost_estimate=cost,
    )(x, adj, wqkv, bqkv, gamma, alibi, wo, bo)


# ---------------- pure-JAX reference (module semantics, original layouts) ----------------
def mhsa_reference(x, adj, weights, in_bias, alibi_bias, gamma, out_w, out_bias):
    b, s, h = x.shape
    qkv = x @ weights + in_bias[None]                                   # [B, S, 3H]
    qkv = qkv.reshape(b, s, NUM_HEADS, 3 * HEAD_SIZE).transpose(0, 2, 1, 3)
    q, k, v = jnp.split(qkv, 3, axis=3)                                 # [B, nh, S, hs] each
    att = jnp.einsum("bhqd,bhkd->bhqk", q, k) / TEMPERATURE / (HEAD_SIZE ** 0.5)
    att = att + alibi_bias[None]
    att = att + gamma[None, :, None, None] * adj                        # adj: [B, 1, S, S]
    att = jax.nn.softmax(att, axis=-1)
    out = jnp.einsum("bhqk,bhkd->bhqd", att, v)
    out = out.transpose(0, 2, 1, 3).reshape(b, s, h)
    out = out @ out_w.T + out_bias[None]
    return out


# ---------------- main ----------------
if __name__ == "__main__":
    key = jax.random.PRNGKey(0)
    keys = jax.random.split(key, 7)

    x = jax.random.normal(keys[0], (B, S, H), dtype=jnp.float32)
    adj = jax.random.normal(keys[1], (B, 1, S, S), dtype=jnp.float32)

    # Parameters (xavier-normal-scale weights; small random biases/gamma so every
    # code path in the kernel is actually exercised by the check).
    std_w = math.sqrt(2.0 / (H + 3 * H))
    weights = std_w * jax.random.normal(keys[2], (H, 3 * H), dtype=jnp.float32)
    std_ow = math.sqrt(2.0 / (H + H))
    out_w = std_ow * jax.random.normal(keys[3], (H, H), dtype=jnp.float32)
    in_bias = 0.1 * jax.random.normal(keys[4], (1, 3 * H), dtype=jnp.float32)
    out_bias = 0.1 * jax.random.normal(keys[5], (1, H), dtype=jnp.float32)
    gamma = 1.0 + 0.1 * jax.random.normal(keys[6], (NUM_HEADS,), dtype=jnp.float32)
    alibi_bias = make_alibi_bias(NUM_HEADS, S)      # used by the reference

    # One-time parameter prep (all relayout hoisted off the per-call path).
    params = prepare_params(weights, in_bias, out_w, out_bias, gamma, NUM_HEADS, S)

    out = mhsa_forward(x, adj, params)
    out = jax.block_until_ready(out)

    ref = mhsa_reference(x, adj, weights, in_bias, alibi_bias, gamma, out_w, out_bias)
    np.testing.assert_allclose(np.asarray(out), np.asarray(ref), rtol=2e-3, atol=2e-3)

    print("KERNEL_OK")
</pallas_src>

<mosaic_0001>
module attributes {stable_mosaic.version = 11 : i64} {
  func.func @mhsa_kernel(%arg0: i32, %arg1: memref<2x8x32xf32, #tpu.memory_space<vmem>>, %arg2: memref<2x1x8x8xf32, #tpu.memory_space<vmem>>, %arg3: memref<32x96xf32, #tpu.memory_space<vmem>>, %arg4: memref<1x96xf32, #tpu.memory_space<vmem>>, %arg5: memref<4x1x1x1xf32, #tpu.memory_space<vmem>>, %arg6: memref<4x1x8x8xf32, #tpu.memory_space<vmem>>, %arg7: memref<4x8x32xf32, #tpu.memory_space<vmem>>, %arg8: memref<1x32xf32, #tpu.memory_space<vmem>>, %arg9: memref<2x8x32xf32, #tpu.memory_space<vmem>>) attributes {dimension_semantics = [#tpu.dimension_semantics<parallel>], iteration_bounds = array<i64: 1>, scalar_prefetch = 0 : i64, scratch_operands = 0 : i64, tpu.core_type = #tpu.core_type<tc>, window_params = [{transform_indices = @transform_0, window_bounds = array<i64: 2, 8, 32>}, {transform_indices = @transform_1, window_bounds = array<i64: 2, 1, 8, 8>}, {pipeline_mode = #tpu.pipeline_mode<synchronous>, transform_indices = @transform_2, window_bounds = array<i64: 32, 96>}, {pipeline_mode = #tpu.pipeline_mode<synchronous>, transform_indices = @transform_3, window_bounds = array<i64: 1, 96>}, {pipeline_mode = #tpu.pipeline_mode<synchronous>, transform_indices = @transform_4, window_bounds = array<i64: 4, 1, 1, 1>}, {pipeline_mode = #tpu.pipeline_mode<synchronous>, transform_indices = @transform_5, window_bounds = array<i64: 4, 1, 8, 8>}, {pipeline_mode = #tpu.pipeline_mode<synchronous>, transform_indices = @transform_6, window_bounds = array<i64: 4, 8, 32>}, {pipeline_mode = #tpu.pipeline_mode<synchronous>, transform_indices = @transform_7, window_bounds = array<i64: 1, 32>}, {transform_indices = @transform_8, window_bounds = array<i64: 2, 8, 32>}]} {
    %c0 = arith.constant 0 : index
    %c0_0 = arith.constant 0 : index
    %c0_1 = arith.constant 0 : index
    %0 = vector.load %arg1[%c0, %c0_0, %c0_1] : memref<2x8x32xf32, #tpu.memory_space<vmem>>, vector<2x8x32xf32>
    %1 = vector.shape_cast %0 : vector<2x8x32xf32> to vector<16x32xf32>
    %c0_2 = arith.constant 0 : index
    %c0_3 = arith.constant 0 : index
    %2 = vector.load %arg3[%c0_2, %c0_3] : memref<32x96xf32, #tpu.memory_space<vmem>>, vector<32x96xf32>
    %cst = arith.constant dense<0.000000e+00> : vector<16x96xf32>
    %3 = tpu.matmul %1, %2, %cst {dimension_numbers = #tpu.dot_dimension_numbers<[1], [0], [0], [1], [0, 0, 1, 1], [], []>} : vector<16x32xf32>, vector<32x96xf32>, vector<16x96xf32> -> vector<16x96xf32>
    %c0_4 = arith.constant 0 : index
    %c0_5 = arith.constant 0 : index
    %4 = vector.load %arg4[%c0_4, %c0_5] : memref<1x96xf32, #tpu.memory_space<vmem>>, vector<1x96xf32>
    %5 = vector.broadcast %4 : vector<1x96xf32> to vector<16x96xf32>
    %6 = arith.addf %3, %5 : vector<16x96xf32>
    %7 = vector.extract_strided_slice %6 {offsets = [0, 0], sizes = [16, 8], strides = [1, 1]} : vector<16x96xf32> to vector<16x8xf32>
    %8 = vector.extract_strided_slice %6 {offsets = [0, 8], sizes = [16, 8], strides = [1, 1]} : vector<16x96xf32> to vector<16x8xf32>
    %9 = vector.extract_strided_slice %6 {offsets = [0, 16], sizes = [16, 8], strides = [1, 1]} : vector<16x96xf32> to vector<16x8xf32>
    %10 = vector.extract_strided_slice %6 {offsets = [0, 24], sizes = [16, 8], strides = [1, 1]} : vector<16x96xf32> to vector<16x8xf32>
    %11 = vector.shape_cast %7 : vector<16x8xf32> to vector<1x16x8xf32>
    %12 = vector.shape_cast %8 : vector<16x8xf32> to vector<1x16x8xf32>
    %13 = vector.shape_cast %9 : vector<16x8xf32> to vector<1x16x8xf32>
    %14 = vector.shape_cast %10 : vector<16x8xf32> to vector<1x16x8xf32>
    %15 = tpu.concatenate %11, %12, %13, %14 in 0 : vector<1x16x8xf32>, vector<1x16x8xf32>, vector<1x16x8xf32>, vector<1x16x8xf32> -> vector<4x16x8xf32>
    %16 = vector.shape_cast %15 : vector<4x16x8xf32> to vector<8x8x8xf32>
    %17 = vector.extract_strided_slice %6 {offsets = [0, 32], sizes = [16, 8], strides = [1, 1]} : vector<16x96xf32> to vector<16x8xf32>
    %18 = vector.extract_strided_slice %6 {offsets = [0, 40], sizes = [16, 8], strides = [1, 1]} : vector<16x96xf32> to vector<16x8xf32>
    %19 = vector.extract_strided_slice %6 {offsets = [0, 48], sizes = [16, 8], strides = [1, 1]} : vector<16x96xf32> to vector<16x8xf32>
    %20 = vector.extract_strided_slice %6 {offsets = [0, 56], sizes = [16, 8], strides = [1, 1]} : vector<16x96xf32> to vector<16x8xf32>
    %21 = vector.shape_cast %17 : vector<16x8xf32> to vector<1x16x8xf32>
    %22 = vector.shape_cast %18 : vector<16x8xf32> to vector<1x16x8xf32>
    %23 = vector.shape_cast %19 : vector<16x8xf32> to vector<1x16x8xf32>
    %24 = vector.shape_cast %20 : vector<16x8xf32> to vector<1x16x8xf32>
    %25 = tpu.concatenate %21, %22, %23, %24 in 0 : vector<1x16x8xf32>, vector<1x16x8xf32>, vector<1x16x8xf32>, vector<1x16x8xf32> -> vector<4x16x8xf32>
    %26 = vector.shape_cast %25 : vector<4x16x8xf32> to vector<8x8x8xf32>
    %27 = vector.extract_strided_slice %6 {offsets = [0, 64], sizes = [16, 8], strides = [1, 1]} : vector<16x96xf32> to vector<16x8xf32>
    %28 = vector.extract_strided_slice %6 {offsets = [0, 72], sizes = [16, 8], strides = [1, 1]} : vector<16x96xf32> to vector<16x8xf32>
    %29 = vector.extract_strided_slice %6 {offsets = [0, 80], sizes = [16, 8], strides = [1, 1]} : vector<16x96xf32> to vector<16x8xf32>
    %30 = vector.extract_strided_slice %6 {offsets = [0, 88], sizes = [16, 8], strides = [1, 1]} : vector<16x96xf32> to vector<16x8xf32>
    %31 = vector.shape_cast %27 : vector<16x8xf32> to vector<1x16x8xf32>
    %32 = vector.shape_cast %28 : vector<16x8xf32> to vector<1x16x8xf32>
    %33 = vector.shape_cast %29 : vector<16x8xf32> to vector<1x16x8xf32>
    %34 = vector.shape_cast %30 : vector<16x8xf32> to vector<1x16x8xf32>
    %35 = tpu.concatenate %31, %32, %33, %34 in 0 : vector<1x16x8xf32>, vector<1x16x8xf32>, vector<1x16x8xf32>, vector<1x16x8xf32> -> vector<4x16x8xf32>
    %36 = vector.shape_cast %35 : vector<4x16x8xf32> to vector<8x8x8xf32>
    "tpu.trace_start"() <{level = 10 : i32, message = "gqd,gkd->gqk"}> : () -> ()
    %cst_6 = arith.constant dense<0.000000e+00> : vector<8x8x8xf32>
    %37 = tpu.matmul %16, %26, %cst_6 {dimension_numbers = #tpu.dot_dimension_numbers<[2], [2], [1], [1], [0, 0, 0, 1, 1, 1], [0], [0]>} : vector<8x8x8xf32>, vector<8x8x8xf32>, vector<8x8x8xf32> -> vector<8x8x8xf32>
    "tpu.trace_stop"() : () -> ()
    %c0_7 = arith.constant 0 : index
    %c0_8 = arith.constant 0 : index
    %c0_9 = arith.constant 0 : index
    %c0_10 = arith.constant 0 : index
    %38 = vector.load %arg2[%c0_7, %c0_8, %c0_9, %c0_10] : memref<2x1x8x8xf32, #tpu.memory_space<vmem>>, vector<2x1x8x8xf32>
    %39 = vector.shape_cast %38 : vector<2x1x8x8xf32> to vector<1x2x8x8xf32>
    %c0_11 = arith.constant 0 : index
    %c0_12 = arith.constant 0 : index
    %c0_13 = arith.constant 0 : index
    %c0_14 = arith.constant 0 : index
    %40 = vector.load %arg6[%c0_11, %c0_12, %c0_13, %c0_14] : memref<4x1x8x8xf32, #tpu.memory_space<vmem>>, vector<4x1x8x8xf32>
    %c0_15 = arith.constant 0 : index
    %c0_16 = arith.constant 0 : index
    %c0_17 = arith.constant 0 : index
    %c0_18 = arith.constant 0 : index
    %41 = vector.load %arg5[%c0_15, %c0_16, %c0_17, %c0_18] : memref<4x1x1x1xf32, #tpu.memory_space<vmem>>, vector<4x1x1x1xf32>
    %42 = vector.broadcast %41 : vector<4x1x1x1xf32> to vector<4x2x8x8xf32>
    %43 = vector.broadcast %39 : vector<1x2x8x8xf32> to vector<4x2x8x8xf32>
    %44 = arith.mulf %42, %43 : vector<4x2x8x8xf32>
    %45 = vector.broadcast %40 : vector<4x1x8x8xf32> to vector<4x2x8x8xf32>
    %46 = arith.addf %45, %44 : vector<4x2x8x8xf32>
    %47 = vector.shape_cast %46 : vector<4x2x8x8xf32> to vector<8x8x8xf32>
    %48 = arith.addf %37, %47 : vector<8x8x8xf32>
    %cst_19 = arith.constant dense<0xFF800000> : vector<8x8xf32>
    %49 = vector.multi_reduction <maximumf>, %48, %cst_19 [2] : vector<8x8x8xf32> to vector<8x8xf32>
    %50 = vector.shape_cast %49 : vector<8x8xf32> to vector<8x8x1xf32>
    %51 = vector.broadcast %50 : vector<8x8x1xf32> to vector<8x8x8xf32>
    %52 = arith.subf %48, %51 : vector<8x8x8xf32>
    %53 = math.exp %52 : vector<8x8x8xf32>
    %cst_20 = arith.constant dense<0.000000e+00> : vector<8x8xf32>
    %54 = vector.multi_reduction <add>, %53, %cst_20 [2] : vector<8x8x8xf32> to vector<8x8xf32>
    %55 = vector.shape_cast %54 : vector<8x8xf32> to vector<8x8x1xf32>
    %56 = vector.broadcast %55 : vector<8x8x1xf32> to vector<8x8x8xf32>
    %57 = arith.divf %53, %56 : vector<8x8x8xf32>
    "tpu.trace_start"() <{level = 10 : i32, message = "gqk,gkd->gqd"}> : () -> ()
    %cst_21 = arith.constant dense<0.000000e+00> : vector<8x8x8xf32>
    %58 = tpu.matmul %57, %36, %cst_21 {dimension_numbers = #tpu.dot_dimension_numbers<[2], [1], [1], [2], [0, 0, 0, 1, 1, 2], [0], [0]>} : vector<8x8x8xf32>, vector<8x8x8xf32>, vector<8x8x8xf32> -> vector<8x8x8xf32>
    "tpu.trace_stop"() : () -> ()
    %59 = vector.shape_cast %58 : vector<8x8x8xf32> to vector<4x16x8xf32>
    %c0_22 = arith.constant 0 : index
    %c0_23 = arith.constant 0 : index
    %c0_24 = arith.constant 0 : index
    %60 = vector.load %arg7[%c0_22, %c0_23, %c0_24] : memref<4x8x32xf32, #tpu.memory_space<vmem>>, vector<4x8x32xf32>
    "tpu.trace_start"() <{level = 10 : i32, message = "hmd,hde->hme"}> : () -> ()
    %cst_25 = arith.constant dense<0.000000e+00> : vector<4x16x32xf32>
    %61 = tpu.matmul %59, %60, %cst_25 {dimension_numbers = #tpu.dot_dimension_numbers<[2], [1], [1], [2], [0, 0, 0, 1, 1, 2], [0], [0]>} : vector<4x16x8xf32>, vector<4x8x32xf32>, vector<4x16x32xf32> -> vector<4x16x32xf32>
    "tpu.trace_stop"() : () -> ()
    %cst_26 = arith.constant dense<0.000000e+00> : vector<16x32xf32>
    %62 = vector.multi_reduction <add>, %61, %cst_26 [0] : vector<4x16x32xf32> to vector<16x32xf32>
    %c0_27 = arith.constant 0 : index
    %c0_28 = arith.constant 0 : index
    %63 = vector.load %arg8[%c0_27, %c0_28] : memref<1x32xf32, #tpu.memory_space<vmem>>, vector<1x32xf32>
    %64 = vector.broadcast %63 : vector<1x32xf32> to vector<16x32xf32>
    %65 = arith.addf %62, %64 : vector<16x32xf32>
    %66 = vector.shape_cast %65 : vector<16x32xf32> to vector<2x8x32xf32>
    %c0_29 = arith.constant 0 : index
    %c0_30 = arith.constant 0 : index
    %c0_31 = arith.constant 0 : index
    %67 = vector.load %arg9[%c0_29, %c0_30, %c0_31] : memref<2x8x32xf32, #tpu.memory_space<vmem>>, vector<2x8x32xf32>
    tpu.vector_store %arg9[%c0_29, %c0_30, %c0_31], %66 {strides = array<i32>} : memref<2x8x32xf32, #tpu.memory_space<vmem>>, vector<2x8x32xf32>,
    return
  }
  func.func @transform_0(%arg0: i32) -> (i32, i32, i32) {
    %c0_i32 = arith.constant 0 : i32
    %c0_i32_0 = arith.constant 0 : i32
    %c0_i32_1 = arith.constant 0 : i32
    return %arg0, %c0_i32, %c0_i32_0 : i32, i32, i32
  }
  func.func @transform_1(%arg0: i32) -> (i32, i32, i32, i32) {
    %c0_i32 = arith.constant 0 : i32
    %c0_i32_0 = arith.constant 0 : i32
    %c0_i32_1 = arith.constant 0 : i32
    %c0_i32_2 = arith.constant 0 : i32
    return %arg0, %c0_i32, %c0_i32_0, %c0_i32_1 : i32, i32, i32, i32
  }
  func.func @transform_2(%arg0: i32) -> (i32, i32) {
    %c0_i32 = arith.constant 0 : i32
    %c0_i32_0 = arith.constant 0 : i32
    %c0_i32_1 = arith.constant 0 : i32
    return %c0_i32, %c0_i32_0 : i32, i32
  }
  func.func @transform_3(%arg0: i32) -> (i32, i32) {
    %c0_i32 = arith.constant 0 : i32
    %c0_i32_0 = arith.constant 0 : i32
    %c0_i32_1 = arith.constant 0 : i32
    return %c0_i32, %c0_i32_0 : i32, i32
  }
  func.func @transform_4(%arg0: i32) -> (i32, i32, i32, i32) {
    %c0_i32 = arith.constant 0 : i32
    %c0_i32_0 = arith.constant 0 : i32
    %c0_i32_1 = arith.constant 0 : i32
    %c0_i32_2 = arith.constant 0 : i32
    %c0_i32_3 = arith.constant 0 : i32
    return %c0_i32, %c0_i32_0, %c0_i32_1, %c0_i32_2 : i32, i32, i32, i32
  }
  func.func @transform_5(%arg0: i32) -> (i32, i32, i32, i32) {
    %c0_i32 = arith.constant 0 : i32
    %c0_i32_0 = arith.constant 0 : i32
    %c0_i32_1 = arith.constant 0 : i32
    %c0_i32_2 = arith.constant 0 : i32
    %c0_i32_3 = arith.constant 0 : i32
    return %c0_i32, %c0_i32_0, %c0_i32_1, %c0_i32_2 : i32, i32, i32, i32
  }
  func.func @transform_6(%arg0: i32) -> (i32, i32, i32) {
    %c0_i32 = arith.constant 0 : i32
    %c0_i32_0 = arith.constant 0 : i32
    %c0_i32_1 = arith.constant 0 : i32
    %c0_i32_2 = arith.constant 0 : i32
    return %c0_i32, %c0_i32_0, %c0_i32_1 : i32, i32, i32
  }
  func.func @transform_7(%arg0: i32) -> (i32, i32) {
    %c0_i32 = arith.constant 0 : i32
    %c0_i32_0 = arith.constant 0 : i32
    %c0_i32_1 = arith.constant 0 : i32
    return %c0_i32, %c0_i32_0 : i32, i32
  }
  func.func @transform_8(%arg0: i32) -> (i32, i32, i32) {
    %c0_i32 = arith.constant 0 : i32
    %c0_i32_0 = arith.constant 0 : i32
    %c0_i32_1 = arith.constant 0 : i32
    return %arg0, %c0_i32, %c0_i32_0 : i32, i32, i32
  }
}

</mosaic_0001>

<bundles_post_ra>
// kernel: mhsa_forward.1
= control target key start
LH: loop header
LB: loop body
LE: loop exit
PB: predicated region body
PF: predicated region fallthrough
CT: control target
= control target key end

     0   :  { %13 = vsyncpa [#allocation3], 0  ;;  %s1506_s0 = inlined_call_operand.hbm [shape: f32[2,8,32], index: 0, kind: input, shape index: {}]   ;;  %s1507_s1 = inlined_call_operand.hbm [shape: f32[2,1,8,8], index: 1, kind: input, shape index: {}]   ;;  %s1508_s2 = inlined_call_operand.hbm [shape: f32[32,96], index: 2, kind: input, shape index: {}]   ;;  %s1509_s3 = inlined_call_operand.vmem [shape: f32[1,96], index: 3, kind: input, shape index: {}]   ;;  %s1510_s4 = inlined_call_operand.vmem [shape: f32[4,1,1,1], index: 4, kind: input, shape index: {}]   ;;  %s1511_s5 = inlined_call_operand.hbm [shape: f32[4,1,8,8], index: 5, kind: input, shape index: {}]   ;;  %s1512_s6 = inlined_call_operand.hbm [shape: f32[4,8,32], index: 6, kind: input, shape index: {}]   ;;  %s1513_s7 = inlined_call_operand.vmem [shape: f32[1,32], index: 7, kind: input, shape index: {}]   ;;  %s1514_s8 = inlined_call_operand.hbm [shape: f32[2,8,32], index: 8, kind: output, shape index: {}]  }
   0x1   :  { %14 = vsyncpa [#allocation6], 0 }
   0x2   :  { %15 = vsyncpa [#allocation9], 0 }
   0x3   :  { %16 = vsyncpa [#allocation4], 0  ;;  %s34_s29 = sshll.u32 %s1507_s1, 4  ;;  %s1240_s30 = smov [#allocation5]   ;;  %s35_s29 = int_to_ptr.hbm [resolvable:$true] %s34_s29 }
   0x4   :  { %s36_s9 = sshll.u32 %s1240_s30, 4  ;;  %s64_s12 = sshll.u32 %s1511_s5, 4  ;;  %s37_s9 = int_to_ptr.vmem [resolvable:$true] %s36_s9  ;;  %s65_s12 = int_to_ptr.hbm [resolvable:$true] %s64_s12 }
   0x5   :  { %s1241_s13 = smov 128   ;;  %s1242_s14 = smov 8  }
   0x6   :  { %42 = dma.hbm_to_vmem [thread:$0]  %s35_s29, 256, %s37_s9, [#allocation6], %s1241_s13, %s1241_s13, %s1242_s14  }
   0x7   :  { %s1243_s15 = smov [#allocation8]   ;;  %s21_s1 = sshll.u32 %s1506_s0, 4  ;;  %s22_s1 = int_to_ptr.hbm [resolvable:$true] %s21_s1 }
   0x8   :  { %s66_s16 = sshll.u32 %s1243_s15, 4  ;;  %s47_s20 = sshll.u32 %s1508_s2, 4  ;;  %s67_s16 = int_to_ptr.vmem [resolvable:$true] %s66_s16  ;;  %s48_s20 = int_to_ptr.hbm [resolvable:$true] %s47_s20 }
   0x9   :  { %72 = dma.hbm_to_vmem [thread:$0]  %s65_s12, 512, %s67_s16, [#allocation9], %s1241_s13, %s1241_s13, %s1242_s14  }
   0xa   :  { %s1244_s21 = smov [#allocation2]   ;;  %s1245_s23 = smov [#allocation7]  }
   0xb   :  { %s23_s22 = sshll.u32 %s1244_s21, 4  ;;  %s49_s0 = sshll.u32 %s1245_s23, 4  ;;  %s24_s22 = int_to_ptr.vmem [resolvable:$true] %s23_s22  ;;  %s50_s0 = int_to_ptr.vmem [resolvable:$true] %s49_s0 }
   0xc   :  { %29 = dma.hbm_to_vmem [thread:$0]  %s22_s1, 256, %s24_s22, [#allocation3], %s1241_s13, %s1241_s13, %s1242_s14  }
   0xd   :  { %s77_s26 = sshll.u32 %s1512_s6, 4  ;;  %s1246_s2 = smov [#allocation10]   ;;  %s78_s26 = int_to_ptr.hbm [resolvable:$true] %s77_s26 }
   0xe   :  { %55 = dma.hbm_to_vmem [thread:$0]  %s48_s20, 512, %s50_s0, [#allocation6], %s1241_s13, %s1241_s13, %s1242_s14  }
   0xf   :  { %s79_s27 = sshll.u32 %s1246_s2, 4  ;;  %s80_s27 = int_to_ptr.vmem [resolvable:$true] %s79_s27 }
  0x10   :  { %85 = dma.hbm_to_vmem [thread:$0]  %s78_s26, 512, %s80_s27, [#allocation9], %s1241_s13, %s1241_s13, %s1242_s14  }
  0x11   :  { %1232 = dma.done.wait [#allocation3], 256  }
  0x12   :  { %1233 = vsyncadd [#allocation3], 4294967040 }
  0x13   :  { %1234 = dma.done.wait [#allocation6], 768  }
  0x14   :  { %1235 = vsyncadd [#allocation6], 4294966528 }
  0x15   :  { %1236 = dma.done.wait [#allocation9], 1024  }
  0x16   :  { %1237 = vsyncadd [#allocation9], 4294966272  ;;  %v113_v0 = vld [vmem:[#allocation7 + $0x18] sm:$0xff]  ;;  %v112_v1 = vld [vmem:[#allocation7 + $0x10] sm:$0xff]  ;;  %vm118_vm0 = vcmask 261120   ;;  %s1247_s29 = smov 104  }
  0x17   :  { %137 = vmatpush.msra.mxu0 %v113_v0  ;;  %v111_v2 = vld [vmem:[#allocation7 + $0x8] sm:$0xff]  ;;  %v110_v3 = vld [vmem:[#allocation7] sm:$0xff]  ;;  %s1248_s30 = smov 120   ;;  %s1249_s9 = smov 112   ;;  %v1251_v11 = vmov 0   ;;  %vm214_vm1 = vcmask 64512  }
  0x18   :  { %v108_v4 = vld [vmem:[#allocation2] sm:$0xff]  ;;  %v109_v5 = vld [vmem:[#allocation2 + $0x8] sm:$0xff]  ;;  %1032 = vset.pattern.permute.xlu2 %v1251_v11  ;;  %1033 = vset.pattern.permute.xlu0 %v1251_v11  ;;  %v163_v30 = vld [vmem:[#allocation5 + $0x8] sm:$0xff]  ;;  %s969_s23 = sshll.u32 %s1514_s8, 4  ;;  %s970_s23 = int_to_ptr.hbm [resolvable:$true] %s969_s23 }
  0x19   :  { %138 = vmatpush.msra.mxu0 %v112_v1  ;;  %v1050_v6 = vld [vmem:[%s1509_s3] ss:$0 sm:$0xff]  ;;  %s1250_s3 = smov 96   ;;  %1034 = vset.pattern.permute.xlu1 %v1251_v11  ;;  %v1052_v21 = vld [vmem:[%s1510_s4 + $0x1] ss:$0 sm:$0xff]  ;;  %v162_v32 = vld [vmem:[#allocation5] sm:$0xff] }
  0x1a   :  { %v1051_v19 = vld [vmem:[%s1510_s4] ss:$0 sm:$0xff]  ;;  %v1053_v22 = vld [vmem:[%s1510_s4 + $0x2] ss:$0 sm:$0xff]  ;;  %v1054_v27 = vld [vmem:[%s1510_s4 + $0x3] ss:$0 sm:$0xff] }
  0x1b   :  { %139 = vmatpush.msra.mxu0 %v111_v2  ;;  %v164_v35 = vld [vmem:[#allocation8] sm:$0xff]  ;;  %v165_v46 = vld [vmem:[#allocation8 + $0x8] sm:$0xff]  ;;  %v166_v56 = vld [vmem:[#allocation8 + $0x10] sm:$0xff]  ;;  %s1252_s4 = smov 64  }
  0x1c   :  { %v167_v62 = vld [vmem:[#allocation8 + $0x18] sm:$0xff] }
  0x1d   :  { %140 = vmatpush.msra.mxu0 %v110_v3 }
  0x1e   :  { %984 = vmatmul.msk.f32.vlgmr.msra.gmra.mxu0 %vm118_vm0, %v108_v4 }
  0x26   :  { %985 = vmatmul.msk.f32.gmra.mxu0 %vm118_vm0, %v109_v5 }
  0x9b   :  { %v142_v7 = vpop.f32.mrf.mxu0 }
  0x9c   :  { %v1334_v8 = vadd.f32 %v1050_v6, %v142_v7 }
  0x9e   :  { %158 = vrot.lane.b32.xlu2 %v1334_v8, %s1247_s29  ;;  %150 = vrot.lane.b32.xlu0 %v1334_v8, %s1248_s30 }
  0xa3   :  { %v145_v9 = vpop.f32.mrf.mxu0 }
  0xa4   :  { %v1338_v10 = vadd.f32 %v1050_v6, %v145_v9 }
  0xa6   :  { %152 = vrot.lane.b32.xlu1 %v1338_v10, %s1248_s30  ;;  %154 = vrot.lane.b32.xlu0 %v1334_v8, %s1249_s9 }
  0xa7   :  { %156 = vrot.lane.b32.xlu2 %v1338_v10, %s1249_s9 }
  0xae   :  { %160 = vrot.lane.b32.xlu1 %v1338_v10, %s1247_s29  ;;  %239 = vrot.lane.b32.xlu0 %v1338_v10, %s1250_s3 }
  0xb6   :  { %212 = vrot.lane.b32.xlu1 %v1334_v8, %s1250_s3 }
  0xf8   :  { %v1349_v13 = vpop.permute.xlu2 %158 }
 0x101   :  { %v1357_v16 = vpop.permute.xlu2 %156 }
 0x110   :  { %v1346_v12 = vpop.permute.xlu0 %150 }
 0x111   :  { %265 = vrot.lane.b32.xlu2 %v1346_v12, %s1250_s3 }
 0x118   :  { %v1351_v14 = vpop.permute.xlu1 %152  ;;  %v1353_v15 = vpop.permute.xlu0 %154 }
 0x119   :  { %291 = vrot.lane.b32.xlu1 %v1351_v14, %s1250_s3  ;;  %317 = vrot.lane.b32.xlu0 %v1353_v15, %s1250_s3 }
 0x120   :  { %v1359_v17 = vpop.permute.xlu1 %160  ;;  %v240_v18 = vpop.permute.xlu0 %239 }
 0x121   :  { %343 = vrot.lane.b32.xlu1 %v1357_v16, %s1250_s3  ;;  %395 = vrot.lane.b32.xlu2 %v1359_v17, %s1250_s3 }
 0x122   :  { %369 = vrot.lane.b32.xlu0 %v1349_v13, %s1250_s3  ;;  %988 = vmatpush.xpose.msk.msra.mxu2 %vm214_vm1, %v240_v18 }
 0x125   :  { %989 = vmatmul.msk.f32.vlgmr.msra.gmra.mxu2 %vm214_vm1, %v1338_v10 }
 0x128   :  { %v213_v20 = vpop.permute.xlu1 %212 }
 0x129   :  { %986 = vmatpush.xpose.msk.msra.mxu1 %vm214_vm1, %v213_v20  ;;  %181 = vperm.xlu2 %1032, %v1051_v19  }
 0x12a   :  { %185 = vperm.xlu0 %1033, %v1052_v21   ;;  %189 = vperm.xlu1 %1034, %v1053_v22  }
 0x12c   :  { %987 = vmatmul.msk.f32.vlgmr.msra.gmra.mxu1 %vm214_vm1, %v1334_v8 }
 0x131   :  { %193 = vperm.xlu2 %1032, %v1054_v27   ;;  %v1035_v27 = vpack.i.bf16 %v1346_v12, %v1334_v8 }
 0x16b   :  { %v266_v23 = vpop.permute.xlu2 %265 }
 0x16c   :  { %990 = vmatpush.xpose.msk.msra.mxu3 %vm214_vm1, %v266_v23 }
 0x16f   :  { %991 = vmatmul.msk.f32.vlgmr.msra.gmra.mxu3 %vm214_vm1, %v1346_v12 }
 0x17b   :  { %v396_v26 = vpop.permute.xlu2 %395 }
 0x183   :  { %v182_v31 = vpop.permute.xlu2 %181 }
 0x184   :  { %v197_v33 = vmul.f32 %v182_v31, %v163_v30  ;;  %v196_v34 = vmul.f32 %v182_v31, %v162_v32 }
 0x186   :  { %v205_v36 = vadd.f32 %v197_v33, %v164_v35  ;;  %v204_v37 = vadd.f32 %v196_v34, %v164_v35 }
 0x18b   :  { %v292_v24 = vpop.permute.xlu1 %291  ;;  %v318_v25 = vpop.permute.xlu0 %317 }
 0x18c   :  { %992 = vmatpush.xpose.msk.msrb.mxu1 %vm214_vm1, %v292_v24  ;;  %994 = vmatpush.xpose.msk.msrb.mxu2 %vm214_vm1, %v318_v25  ;;  %v194_v57 = vpop.permute.xlu2 %193 }
 0x18d   :  { %v202_v61 = vmul.f32 %v194_v57, %v162_v32  ;;  %v203_v2 = vmul.f32 %v194_v57, %v163_v30 }
 0x18f   :  { %993 = vmatmul.msk.f32.vlgmr.msrb.gmra.mxu1 %vm214_vm1, %v1351_v14  ;;  %995 = vmatmul.msk.f32.vlgmr.msrb.gmra.mxu2 %vm214_vm1, %v1353_v15  ;;  %v210_v1 = vadd.f32 %v202_v61, %v167_v62  ;;  %v211_v9 = vadd.f32 %v203_v2, %v167_v62 }
 0x190   :  { %1000 = vmatpush.xpose.msk.msra.mxu2 %vm214_vm1, %v396_v26 }
 0x193   :  { %v344_v28 = vpop.permute.xlu1 %343 }
 0x194   :  { %v370_v29 = vpop.permute.xlu0 %369  ;;  %996 = vmatpush.xpose.msk.msrb.mxu3 %vm214_vm1, %v344_v28 }
 0x195   :  { %998 = vmatpush.xpose.msk.msra.mxu1 %vm214_vm1, %v370_v29 }
 0x197   :  { %997 = vmatmul.msk.f32.vlgmr.msrb.gmra.mxu3 %vm214_vm1, %v1357_v16  ;;  %1001 = vmatmul.msk.f32.vlgmr.msra.gmra.mxu2 %vm214_vm1, %v1359_v17 }
 0x198   :  { %999 = vmatmul.msk.f32.vlgmr.msra.gmra.mxu1 %vm214_vm1, %v1349_v13 }
 0x19c   :  { %v186_v44 = vpop.permute.xlu0 %185  ;;  %v190_v52 = vpop.permute.xlu1 %189 }
 0x19d   :  { %v198_v45 = vmul.f32 %v186_v44, %v162_v32  ;;  %v199_v51 = vmul.f32 %v186_v44, %v163_v30  ;;  %v200_v54 = vmul.f32 %v190_v52, %v162_v32  ;;  %v201_v5 = vmul.f32 %v190_v52, %v163_v30 }
 0x19f   :  { %v206_v47 = vadd.f32 %v198_v45, %v165_v46  ;;  %v207_v53 = vadd.f32 %v199_v51, %v165_v46  ;;  %v208_v60 = vadd.f32 %v200_v54, %v166_v56  ;;  %v209_v11 = vadd.f32 %v201_v5, %v166_v56 }
 0x1a8   :  { %v262_v38 = vpop.f32.mrf.mxu2 }
 0x1a9   :  { %v263_v39 = vadd.f32 %v262_v38, %v205_v36  ;;  %v236_v40 = vpop.f32.mrf.mxu1 }
 0x1aa   :  { %v237_v41 = vadd.f32 %v236_v40, %v204_v37 }
 0x1ab   :  { %v424_v42 = vsel %vm214_vm1, %v263_v39, -inf }
 0x1ac   :  { %425 = vmax.xlane.f32.xlu0 %v424_v42  ;;  %v421_v43 = vsel %vm214_vm1, %v237_v41, -inf }
 0x1ad   :  { %422 = vmax.xlane.f32.xlu1 %v421_v43 }
 0x1f2   :  { %v288_v48 = vpop.f32.mrf.mxu3 }
 0x1f3   :  { %v289_v49 = vadd.f32 %v288_v48, %v206_v47 }
 0x1f5   :  { %v427_v50 = vsel %vm214_vm1, %v289_v49, -inf }
 0x1f6   :  { %428 = vmax.xlane.f32.xlu2 %v427_v50 }
 0x20c   :  { %v314_v55 = vpop.f32.mrf.mxu1 }
 0x20d   :  { %v315_v58 = vadd.f32 %v314_v55, %v207_v53 }
 0x20f   :  { %v430_v59 = vsel %vm214_vm1, %v315_v58, -inf }
 0x210   :  { %431 = vmax.xlane.f32.xlu0 %v430_v59 }
 0x212   :  { %v340_v63 = vpop.f32.mrf.mxu2 }
 0x213   :  { %v341_v0 = vadd.f32 %v340_v63, %v208_v60 }
 0x215   :  { %v392_v3 = vpop.f32.mrf.mxu1  ;;  %v433_v4 = vsel %vm214_vm1, %v341_v0, -inf }
 0x216   :  { %v1405_v6 = vadd.f32 %v392_v3, %v210_v1  ;;  %434 = vmax.xlane.f32.xlu2 %v433_v4  ;;  %v1040_v4 = vpack.i.bf16 %v1353_v15, %v1351_v14  ;;  %v1045_v14 = vpack.i.bf16 %v1359_v17, %v1349_v13 }
 0x218   :  { %v439_v7 = vsel %vm214_vm1, %v1405_v6, -inf }
 0x219   :  { %440 = vmax.xlane.f32.xlu1 %v439_v7 }
 0x21a   :  { %v366_v18 = vpop.f32.mrf.mxu3  ;;  %v418_v19 = vpop.f32.mrf.mxu2 }
 0x21b   :  { %v419_v20 = vadd.f32 %v418_v19, %v211_v9  ;;  %v367_v21 = vadd.f32 %v366_v18, %v209_v11 }
 0x21d   :  { %v442_v22 = vsel %vm214_vm1, %v419_v20, -inf  ;;  %v436_v25 = vsel %vm214_vm1, %v367_v21, -inf }
 0x21e   :  { %443 = vmax.xlane.f32.xlu2 %v442_v22 }
 0x21f   :  { %v426_v23 = vpop.xlane.xlu0 %425 }
 0x220   :  { %v423_v24 = vpop.xlane.xlu1 %422  ;;  %v446_v28 = vsub.f32 %v263_v39, %v426_v23 }
 0x221   :  { %v445_v26 = vsub.f32 %v237_v41, %v423_v24  ;;  %437 = vmax.xlane.f32.xlu1 %v436_v25 }
 0x222   :  { %v455_v30 = vmul.f32 1.442695, %v446_v28 }
 0x223   :  { %v453_v29 = vmul.f32 1.442695, %v445_v26 }
 0x224   :  { %1036 = vrot.lane.b32.xlu0 %v1035_v27, %s1252_s4 }
 0x225   :  { %1056 = vpow2.f32 %v453_v29 }
 0x226   :  { %1058 = vpow2.f32 %v455_v30 }
 0x22b   :  { %v1414_v31 = vpop.eup %1056 }
 0x22c   :  { %v469_v32 = vsel %vm214_vm1, %v1414_v31, 0.0  ;;  %v1418_v33 = vpop.eup %1058 }
 0x22d   :  { %470 = vadd.xlane.f32.xlu2 %v469_v32  ;;  %v472_v34 = vsel %vm214_vm1, %v1418_v33, 0.0 }
 0x235   :  { %473 = vadd.xlane.f32.xlu2 %v472_v34 }
 0x269   :  { %v429_v8 = vpop.xlane.xlu2 %428 }
 0x26a   :  { %v447_v12 = vsub.f32 %v289_v49, %v429_v8 }
 0x26c   :  { %v457_v35 = vmul.f32 1.442695, %v447_v12 }
 0x26e   :  { %1060 = vpow2.f32 %v457_v35 }
 0x274   :  { %v1422_v36 = vpop.eup %1060 }
 0x275   :  { %v475_v37 = vsel %vm214_vm1, %v1422_v36, 0.0 }
 0x276   :  { %476 = vadd.xlane.f32.xlu0 %v475_v37 }
 0x283   :  { %v432_v38 = vpop.xlane.xlu0 %431 }
 0x284   :  { %v448_v39 = vsub.f32 %v315_v58, %v432_v38 }
 0x286   :  { %v459_v40 = vmul.f32 1.442695, %v448_v39 }
 0x288   :  { %1062 = vpow2.f32 %v459_v40 }
 0x289   :  { %v435_v41 = vpop.xlane.xlu2 %434 }
 0x28a   :  { %v449_v42 = vsub.f32 %v341_v0, %v435_v41  ;;  %639 = vrot.lane.b32.xlu0 %v1338_v10, %s1252_s4 }
 0x28c   :  { %v461_v43 = vmul.f32 1.442695, %v449_v42  ;;  %v441_v44 = vpop.xlane.xlu1 %440 }
 0x28d   :  { %v451_v61 = vsub.f32 %v1405_v6, %v441_v44 }
 0x28e   :  { %v1428_v45 = vpop.eup %1062  ;;  %1064 = vpow2.f32 %v461_v43 }
 0x28f   :  { %v478_v46 = vsel %vm214_vm1, %v1428_v45, 0.0  ;;  %v465_v63 = vmul.f32 1.442695, %v451_v61 }
 0x290   :  { %479 = vadd.xlane.f32.xlu1 %v478_v46 }
 0x291   :  { %v444_v47 = vpop.xlane.xlu2 %443 }
 0x292   :  { %v452_v48 = vsub.f32 %v419_v20, %v444_v47 }
 0x294   :  { %v1432_v49 = vpop.eup %1064  ;;  %v467_v50 = vmul.f32 1.442695, %v452_v48  ;;  %v438_v51 = vpop.xlane.xlu1 %437 }
 0x295   :  { %v450_v52 = vsub.f32 %v367_v21, %v438_v51  ;;  %v481_v53 = vsel %vm214_vm1, %v1432_v49, 0.0 }
 0x296   :  { %1066 = vpow2.f32 %v467_v50  ;;  %482 = vadd.xlane.f32.xlu2 %v481_v53  ;;  %v1037_v10 = vpop.permute.xlu0 %1036 }
 0x297   :  { %v1039_v54 = vunpack.i.h.bf16 %v1037_v10  ;;  %v1038_v55 = vunpack.i.l.bf16 %v1037_v10  ;;  %v463_v56 = vmul.f32 1.442695, %v450_v52 }
 0x299   :  { %634 = vmatpush.msra.mxu3 %v1038_v55  ;;  %686 = vmatpush.msrb.mxu1 %v1039_v54  ;;  %1068 = vpow2.f32 %v463_v56 }
 0x29c   :  { %v1436_v57 = vpop.eup %1066 }
 0x29d   :  { %v490_v58 = vsel %vm214_vm1, %v1436_v57, 0.0 }
 0x29e   :  { %491 = vadd.xlane.f32.xlu1 %v490_v58 }
 0x29f   :  { %v1440_v60 = vpop.eup %1068 }
 0x2a0   :  { %v471_v59 = vpop.xlane.xlu2 %470  ;;  %v484_v62 = vsel %vm214_vm1, %v1440_v60, 0.0 }
 0x2a1   :  { %1070 = vrcp.f32 %v471_v59  ;;  %v504_v3 = vand.u32 2147483648, %v471_v59  ;;  %v502_v7 = vand.u32 2147483647, %v471_v59  ;;  %vm498_vm3 = vweird.f32 %v471_v59 }
 0x2a2   :  { %1072 = vpow2.f32 %v465_v63 }
 0x2a3   :  { %v505_v6 = vor.u32 1.1754944e-38, %v504_v3  ;;  %vm503_vm5 = vcmp.eq.f32.partialorder %v502_v7, 8.507059e+37 }
 0x2a6   :  { %485 = vadd.xlane.f32.xlu1 %v484_v62 }
 0x2a7   :  { %v1071_v0 = vpop.eup %1070 }
 0x2a8   :  { %v494_v1 = vmul.f32 %v1071_v0, %v471_v59  ;;  %vm499_vm2 = vweird.f32 %v1071_v0  ;;  %v1448_v11 = vpop.eup %1072  ;;  %v474_v15 = vpop.xlane.xlu2 %473 }
 0x2a9   :  { %vm500_vm4 = vmor %vm498_vm3, %vm499_vm2  ;;  %v487_v21 = vsel %vm214_vm1, %v1448_v11, 0.0  ;;  %1074 = vrcp.f32 %v474_v15  ;;  %v519_v30 = vand.u32 2147483648, %v474_v15  ;;  %vm513_vm7 = vweird.f32 %v474_v15 }
 0x2aa   :  { %v495_v2 = vsub.f32 1.0, %v494_v1  ;;  %v517_v13 = vand.u32 2147483647, %v474_v15 }
 0x2ab   :  { %v520_v8 = vor.u32 1.1754944e-38, %v519_v30 }
 0x2ac   :  { %v496_v5 = vmul.f32 %v1071_v0, %v495_v2  ;;  %vm518_vm11 = vcmp.eq.f32.partialorder %v517_v13, 8.507059e+37 }
 0x2ae   :  { %v497_v9 = vadd.f32 %v1071_v0, %v496_v5  ;;  %1041 = vrot.lane.b32.xlu2 %v1040_v4, %s1252_s4  ;;  %v821_v4 = vld [vmem:[#allocation10] sm:$0xff] }
 0x2af   :  { %v1075_v22 = vpop.eup %1074 }
 0x2b0   :  { %v501_v18 = vsel %vm500_vm4, %v1071_v0, %v497_v9  ;;  %v509_v23 = vmul.f32 %v1075_v22, %v474_v15  ;;  %vm514_vm6 = vweird.f32 %v1075_v22 }
 0x2b1   :  { %v506_v19 = vsel %vm503_vm5, %v505_v6, %v501_v18  ;;  %vm515_vm8 = vmor %vm513_vm7, %vm514_vm6 }
 0x2b2   :  { %v507_v20 = vmul.f32 %v1414_v31, %v506_v19  ;;  %v510_v25 = vsub.f32 1.0, %v509_v23 }
 0x2b4   :  { %488 = vadd.xlane.f32.xlu0 %v487_v21  ;;  %1002 = vmatmul.msk.f32.vlgmr.msra.gmra.mxu3 %vm214_vm1, %v507_v20  ;;  %v511_v26 = vmul.f32 %v1075_v22, %v510_v25 }
 0x2b6   :  { %v512_v29 = vadd.f32 %v1075_v22, %v511_v26 }
 0x2b8   :  { %v516_v34 = vsel %vm515_vm8, %v1075_v22, %v512_v29 }
 0x2b9   :  { %v521_v38 = vsel %vm518_vm11, %v520_v8, %v516_v34 }
 0x2ba   :  { %v522_v42 = vmul.f32 %v1418_v33, %v521_v38 }
 0x2bf   :  { %1046 = vrot.lane.b32.xlu1 %v1045_v14, %s1252_s4 }
 0x2c8   :  { %743 = vrot.lane.b32.xlu0 %v1357_v16, %s1252_s4 }
 0x2e9   :  { %v477_v24 = vpop.xlane.xlu0 %476 }
 0x2ea   :  { %1076 = vrcp.f32 %v477_v24  ;;  %v534_v17 = vand.u32 2147483648, %v477_v24  ;;  %v532_v16 = vand.u32 2147483647, %v477_v24  ;;  %vm528_vm10 = vweird.f32 %v477_v24 }
 0x2ec   :  { %v535_v35 = vor.u32 1.1754944e-38, %v534_v17  ;;  %vm533_vm13 = vcmp.eq.f32.partialorder %v532_v16, 8.507059e+37 }
 0x2f0   :  { %v1077_v27 = vpop.eup %1076 }
 0x2f1   :  { %v524_v28 = vmul.f32 %v1077_v27, %v477_v24  ;;  %vm529_vm9 = vweird.f32 %v1077_v27 }
 0x2f2   :  { %vm530_vm12 = vmor %vm528_vm10, %vm529_vm9 }
 0x2f3   :  { %v525_v31 = vsub.f32 1.0, %v524_v28 }
 0x2f5   :  { %v526_v32 = vmul.f32 %v1077_v27, %v525_v31 }
 0x2f7   :  { %v527_v12 = vadd.f32 %v1077_v27, %v526_v32 }
 0x2f9   :  { %v531_v37 = vsel %vm530_vm12, %v1077_v27, %v527_v12 }
 0x2fa   :  { %v536_v39 = vsel %vm533_vm13, %v535_v35, %v531_v37 }
 0x2fb   :  { %v537_v40 = vmul.f32 %v1422_v36, %v536_v39 }
 0x2fc   :  { %v640_v41 = vpop.permute.xlu0 %639 }
 0x2fd   :  { %660 = vmatpush.msrb.mxu0 %v640_v41  ;;  %1004 = vmatmul.msk.f32.vlgmr.msrb.gmra.mxu1 %vm214_vm1, %v537_v40 }
 0x2fe   :  { %1003 = vmatmul.msk.f32.vlgmr.msrb.gmra.mxu0 %vm214_vm1, %v522_v42 }
 0x303   :  { %v480_v43 = vpop.xlane.xlu1 %479 }
 0x304   :  { %1078 = vrcp.f32 %v480_v43  ;;  %v549_v50 = vand.u32 2147483648, %v480_v43  ;;  %v547_v52 = vand.u32 2147483647, %v480_v43  ;;  %vm543_vm15 = vweird.f32 %v480_v43 }
 0x306   :  { %v550_v55 = vor.u32 1.1754944e-38, %v549_v50  ;;  %vm548_vm3 = vcmp.eq.f32.partialorder %v547_v52, 8.507059e+37 }
 0x309   :  { %v483_v44 = vpop.xlane.xlu2 %482 }
 0x30a   :  { %v1079_v46 = vpop.eup %1078  ;;  %1080 = vrcp.f32 %v483_v44  ;;  %v564_v63 = vand.u32 2147483648, %v483_v44  ;;  %v562_v1 = vand.u32 2147483647, %v483_v44  ;;  %vm558_vm5 = vweird.f32 %v483_v44 }
 0x30b   :  { %v539_v47 = vmul.f32 %v1079_v46, %v480_v43  ;;  %vm544_vm14 = vweird.f32 %v1079_v46 }
 0x30c   :  { %vm545_vm2 = vmor %vm543_vm15, %vm544_vm14  ;;  %v565_v5 = vor.u32 1.1754944e-38, %v564_v63  ;;  %vm563_vm7 = vcmp.eq.f32.partialorder %v562_v1, 8.507059e+37 }
 0x30d   :  { %v540_v48 = vsub.f32 1.0, %v539_v47 }
 0x30f   :  { %v541_v51 = vmul.f32 %v1079_v46, %v540_v48 }
 0x310   :  { %v1081_v36 = vpop.eup %1080 }
 0x311   :  { %v542_v53 = vadd.f32 %v1079_v46, %v541_v51  ;;  %v554_v33 = vmul.f32 %v1081_v36, %v483_v44  ;;  %v1042_v10 = vpop.permute.xlu2 %1041  ;;  %v492_v54 = vpop.xlane.xlu1 %491  ;;  %vm559_vm4 = vweird.f32 %v1081_v36 }
 0x312   :  { %v1044_v56 = vunpack.i.h.bf16 %v1042_v10  ;;  %v1043_v58 = vunpack.i.l.bf16 %v1042_v10  ;;  %1082 = vrcp.f32 %v492_v54  ;;  %vm560_vm6 = vmor %vm558_vm5, %vm559_vm4  ;;  %v609_v25 = vand.u32 2147483648, %v492_v54  ;;  %v823_v10 = vld [vmem:[#allocation10 + $0x10] sm:$0xff] }
 0x313   :  { %v546_v59 = vsel %vm545_vm2, %v1079_v46, %v542_v53  ;;  %v555_v61 = vsub.f32 1.0, %v554_v33  ;;  %vm603_vm9 = vweird.f32 %v492_v54  ;;  %v607_v26 = vand.u32 2147483647, %v492_v54 }
 0x314   :  { %v551_v62 = vsel %vm548_vm3, %v550_v55, %v546_v59  ;;  %712 = vmatpush.msrb.mxu2 %v1043_v58  ;;  %738 = vmatpush.msrb.mxu3 %v1044_v56 }
 0x315   :  { %v556_v0 = vmul.f32 %v1081_v36, %v555_v61  ;;  %v552_v2 = vmul.f32 %v1428_v45, %v551_v62  ;;  %vm608_vm11 = vcmp.eq.f32.partialorder %v607_v26, 8.507059e+37 }
 0x316   :  { %846 = vmatpush.msra.mxu3 %v821_v4 }
 0x317   :  { %v557_v3 = vadd.f32 %v1081_v36, %v556_v0  ;;  %1005 = vmatmul.msk.f32.vlgmr.msrb.gmra.mxu2 %vm214_vm1, %v552_v2 }
 0x318   :  { %v1083_v6 = vpop.eup %1082 }
 0x319   :  { %v561_v7 = vsel %vm560_vm6, %v1081_v36, %v557_v3  ;;  %v486_v9 = vpop.xlane.xlu1 %485  ;;  %v599_v20 = vmul.f32 %v1083_v6, %v492_v54  ;;  %vm604_vm8 = vweird.f32 %v1083_v6  ;;  %v822_v36 = vld [vmem:[#allocation10 + $0x8] sm:$0xff]  ;;  %v824_v54 = vld [vmem:[#allocation10 + $0x18] sm:$0xff] }
 0x31a   :  { %v566_v18 = vsel %vm563_vm7, %v565_v5, %v561_v7  ;;  %1084 = vrcp.f32 %v486_v9  ;;  %vm605_vm10 = vmor %vm603_vm9, %vm604_vm8  ;;  %vm573_vm13 = vweird.f32 %v486_v9  ;;  %v579_v17 = vand.u32 2147483648, %v486_v9  ;;  %v1055_v7 = vld [vmem:[%s1513_s7] ss:$0 sm:$0xff]  ;;  %s1253_s7 = smov [#allocation11]  }
 0x31b   :  { %v567_v19 = vmul.f32 %v1432_v49, %v566_v18  ;;  %v600_v21 = vsub.f32 1.0, %v599_v20  ;;  %v610_v49 = vor.u32 1.1754944e-38, %v609_v25  ;;  %v577_v34 = vand.u32 2147483647, %v486_v9  ;;  %s967_s20 = sshll.u32 %s1253_s7, 4  ;;  %s968_s20 = int_to_ptr.vmem [resolvable:$true] %s967_s20 }
 0x31c   :  { %v580_v42 = vor.u32 1.1754944e-38, %v579_v17 }
 0x31d   :  { %1006 = vmatmul.msk.f32.vlgmr.msrb.gmra.mxu3 %vm214_vm1, %v567_v19  ;;  %v601_v15 = vmul.f32 %v1083_v6, %v600_v21  ;;  %vm578_vm3 = vcmp.eq.f32.partialorder %v577_v34, 8.507059e+37 }
 0x31f   :  { %v602_v24 = vadd.f32 %v1083_v6, %v601_v15 }
 0x320   :  { %v1085_v45 = vpop.eup %1084 }
 0x321   :  { %v569_v14 = vmul.f32 %v1085_v45, %v486_v9  ;;  %v606_v28 = vsel %vm605_vm10, %v1083_v6, %v602_v24  ;;  %vm574_vm12 = vweird.f32 %v1085_v45 }
 0x322   :  { %v611_v31 = vsel %vm608_vm11, %v610_v49, %v606_v28  ;;  %vm1467_vm14 = vmor %vm573_vm13, %vm574_vm12 }
 0x323   :  { %v570_v23 = vsub.f32 1.0, %v569_v14  ;;  %v612_v40 = vmul.f32 %v1436_v57, %v611_v31 }
 0x325   :  { %v571_v27 = vmul.f32 %v1085_v45, %v570_v23 }
 0x327   :  { %v489_v22 = vpop.xlane.xlu0 %488  ;;  %v572_v13 = vadd.f32 %v1085_v45, %v571_v27 }
 0x328   :  { %1086 = vrcp.f32 %v489_v22  ;;  %v594_v8 = vand.u32 2147483648, %v489_v22  ;;  %v592_v39 = vand.u32 2147483647, %v489_v22  ;;  %vm588_vm2 = vweird.f32 %v489_v22 }
 0x329   :  { %v576_v41 = vsel %vm1467_vm14, %v1085_v45, %v572_v13 }
 0x32a   :  { %v595_v44 = vor.u32 1.1754944e-38, %v594_v8  ;;  %v581_v46 = vsel %vm578_vm3, %v580_v42, %v576_v41  ;;  %vm593_vm5 = vcmp.eq.f32.partialorder %v592_v39, 8.507059e+37 }
 0x32b   :  { %v582_v52 = vmul.f32 %v1440_v60, %v581_v46 }
 0x32e   :  { %v1087_v29 = vpop.eup %1086 }
 0x32f   :  { %v584_v30 = vmul.f32 %v1087_v29, %v489_v22  ;;  %vm589_vm15 = vweird.f32 %v1087_v29 }
 0x330   :  { %vm590_vm4 = vmor %vm588_vm2, %vm589_vm15 }
 0x331   :  { %v585_v32 = vsub.f32 1.0, %v584_v30  ;;  %v1047_v16 = vpop.permute.xlu1 %1046 }
 0x332   :  { %v1049_v12 = vunpack.i.h.bf16 %v1047_v16  ;;  %v1048_v35 = vunpack.i.l.bf16 %v1047_v16 }
 0x333   :  { %v586_v38 = vmul.f32 %v1087_v29, %v585_v32 }
 0x334   :  { %790 = vmatpush.msra.mxu1 %v1048_v35  ;;  %816 = vmatpush.msra.mxu2 %v1049_v12 }
 0x335   :  { %v587_v43 = vadd.f32 %v1087_v29, %v586_v38  ;;  %1009 = vmatmul.msk.f32.vlgmr.msra.gmra.mxu2 %vm214_vm1, %v612_v40 }
 0x336   :  { %904 = vmatpush.msrb.mxu1 %v823_v10  ;;  %933 = vmatpush.msrb.mxu2 %v824_v54 }
 0x337   :  { %v591_v47 = vsel %vm590_vm4, %v1087_v29, %v587_v43  ;;  %v636_v48 = vpop.f32.mrf.mxu3 }
 0x338   :  { %v596_v50 = vsel %vm593_vm5, %v595_v44, %v591_v47  ;;  %1010 = vmatmul.msk.f32.vlgmr.msra.gmra.mxu3 %vm214_vm1, %v636_v48 }
 0x339   :  { %v597_v57 = vmul.f32 %v1448_v11, %v596_v50 }
 0x33a   :  { %v744_v51 = vpop.permute.xlu0 %743 }
 0x33b   :  { %764 = vmatpush.msra.mxu0 %v744_v51  ;;  %1008 = vmatmul.msk.f32.vlgmr.msra.gmra.mxu1 %vm214_vm1, %v597_v57 }
 0x33c   :  { %1007 = vmatmul.msk.f32.vlgmr.msra.gmra.mxu0 %vm214_vm1, %v582_v52 }
 0x33d   :  { %875 = vmatpush.msrb.mxu0 %v822_v36 }
 0x37a   :  { %v688_v53 = vpop.f32.mrf.mxu1 }
 0x37b   :  { %v662_v33 = vpop.f32.mrf.mxu0  ;;  %1012 = vmatmul.msk.f32.vlgmr.msrb.gmra.mxu0 %vm214_vm1, %v688_v53 }
 0x37c   :  { %1011 = vmatmul.msk.f32.gmra.mxu3 %vm214_vm1, %v662_v33 }
 0x39a   :  { %v714_v11 = vpop.f32.mrf.mxu2 }
 0x39b   :  { %1013 = vmatmul.msk.f32.gmra.mxu0 %vm214_vm1, %v714_v11 }
 0x3a0   :  { %v740_v60 = vpop.f32.mrf.mxu3 }
 0x3a1   :  { %1014 = vmatmul.msk.f32.vlgmr.msrb.gmra.mxu1 %vm214_vm1, %v740_v60 }
 0x3b8   :  { %v792_v55 = vpop.f32.mrf.mxu1  ;;  %v818_v58 = vpop.f32.mrf.mxu2 }
 0x3b9   :  { %v766_v56 = vpop.f32.mrf.mxu0  ;;  %1016 = vmatmul.msk.f32.vlgmr.msrb.gmra.mxu2 %vm214_vm1, %v792_v55 }
 0x3ba   :  { %1015 = vmatmul.msk.f32.gmra.mxu1 %vm214_vm1, %v766_v56 }
 0x3bb   :  { %v848_v61 = vpop.f32.mrf.mxu3 }
 0x3bc   :  { %v941_v0 = vsel %vm118_vm0, %v848_v61, 0.0 }
 0x3c1   :  { %1017 = vmatmul.msk.f32.gmra.mxu2 %vm214_vm1, %v818_v58 }
 0x3f8   :  { %v877_v59 = vpop.f32.mrf.mxu0 }
 0x3f9   :  { %v942_v63 = vsel %vm118_vm0, %v877_v59, 0.0 }
 0x3fa   :  { %v943_v2 = vadd.f32 %v942_v63, %v941_v0 }
 0x3ff   :  { %v851_v6 = vpop.f32.mrf.mxu3 }
 0x400   :  { %v948_v21 = vsel %vm118_vm0, %v851_v6, 0.0 }
 0x418   :  { %v880_v3 = vpop.f32.mrf.mxu0 }
 0x419   :  { %v949_v20 = vsel %vm118_vm0, %v880_v3, 0.0 }
 0x41a   :  { %v950_v15 = vadd.f32 %v949_v20, %v948_v21 }
 0x41e   :  { %v906_v62 = vpop.f32.mrf.mxu1 }
 0x41f   :  { %v944_v1 = vsel %vm118_vm0, %v906_v62, 0.0 }
 0x420   :  { %v945_v4 = vadd.f32 %v944_v1, %v943_v2 }
 0x437   :  { %v909_v18 = vpop.f32.mrf.mxu1 }
 0x438   :  { %v951_v14 = vsel %vm118_vm0, %v909_v18, 0.0 }
 0x439   :  { %v952_v22 = vadd.f32 %v951_v14, %v950_v15 }
 0x43c   :  { %v935_v5 = vpop.f32.mrf.mxu2 }
 0x43d   :  { %v946_v9 = vsel %vm118_vm0, %v935_v5, 0.0 }
 0x43e   :  { %v947_v19 = vadd.f32 %v946_v9, %v945_v4 }
 0x440   :  { %v959_v45 = vadd.f32 %v1055_v7, %v947_v19 }
 0x442   :  { %961 = vst.msk [vmem:[#allocation11] sm:$0xff] %vm118_vm0, %v959_v45 }
 0x444   :  { %v938_v23 = vpop.f32.mrf.mxu2 }
 0x445   :  { %v953_v24 = vsel %vm118_vm0, %v938_v23, 0.0 }
 0x446   :  { %v954_v25 = vadd.f32 %v953_v24, %v952_v22 }
 0x448   :  { %v960_v26 = vadd.f32 %v1055_v7, %v954_v25 }
 0x44a   :  { %962 = vst.msk [vmem:[#allocation11 + $0x8] sm:$0xff] %vm118_vm0, %v960_v26 }
 0x44b   :  { %975 = dma.vmem_to_hbm [thread:$0]  %s968_s20, 256, %s970_s23, [#allocation4], %s1241_s13, %s1241_s13, %s1242_s14  }
 0x44c   :  { %1238 = dma.done.wait [#allocation4], 256  }
 0x44d   :  { %1239 = vsyncadd [#allocation4], 4294967040 }
 0x44e   :  { %980 = vsyncpa [#allocation3], 1 }
 0x44f   :  { %981 = vsyncpa [#allocation6], 1 }
 0x450   :  { %982 = vsyncpa [#allocation9], 1 }
 0x451   :  { %983 = vsyncpa [#allocation4], 1 }

</bundles_post_ra>
